<compile_context>
chip_gen: v7x
topology: tpu7x:2x2x1
jax: 0.10.0
libtpu: 0.0.40
codegen_flags: <defaults>
</compile_context>

<pallas_src>
import functools
import math

import jax
import jax.numpy as jnp
from jax.experimental import pallas as pl
from jax.experimental.pallas import tpu as pltpu


# ----------------------------------------------------------------------------
# Fused kernel: one grid step == `Bt` batch elements.
#   q/k/v : (Bt, S, D)        mask : (Bt, S, S)
#   wq/wk/wv : (D, H*dh) bf16 wo : (H*dh, d_model) bf16   bo : (1, d_model) f32
#   out : (Bt, S, d_model)
# ----------------------------------------------------------------------------
def _mha_fused_kernel(q_ref, k_ref, v_ref, mask_ref,
                      wq_ref, wk_ref, wv_ref, wo_ref, bo_ref,
                      o_ref, *, num_heads, d_head, matmul_dtype):
    Bt, S, D = q_ref.shape
    H, dh = num_heads, d_head
    d_model = wo_ref.shape[1]
    rows = Bt * S
    md = matmul_dtype
    scale = 1.0 / math.sqrt(dh)

    # --- fused wide projections: (Bt*S, D) x (D, H*dh), bf16 MXU / f32 acc ---
    q2 = q_ref[...].reshape(rows, D).astype(md)
    k2 = k_ref[...].reshape(rows, D).astype(md)
    v2 = v_ref[...].reshape(rows, D).astype(md)

    # fold 1/sqrt(dh) into qp once, in f32, before the bf16 cast
    qp = jnp.dot(q2, wq_ref[...], preferred_element_type=jnp.float32) * scale
    kp = jnp.dot(k2, wk_ref[...], preferred_element_type=jnp.float32)
    vp = jnp.dot(v2, wv_ref[...], preferred_element_type=jnp.float32)

    qp = qp.reshape(Bt, S, H * dh).astype(md)
    kp = kp.reshape(Bt, S, H * dh).astype(md)
    vp = vp.reshape(Bt, S, H * dh).astype(md)

    # additive mask (0 keep / -1e9 masked), computed ONCE per block (f32)
    neg_mask = jnp.where(mask_ref[...] > 0,
                         jnp.float32(0.0), jnp.float32(-1e9))       # (Bt,S,S)

    # --- per-head attention (H is small: static unroll) ---
    head_outs = []
    for h in range(H):
        lo = h * dh
        qh = qp[:, :, lo:lo + dh]                                    # (Bt,S,dh)
        kh = kp[:, :, lo:lo + dh]
        vh = vp[:, :, lo:lo + dh]

        # batched QK^T, f32 accumulation
        s = jnp.einsum("bqd,bkd->bqk", qh, kh,
                       preferred_element_type=jnp.float32) + neg_mask

        # numerically-stable softmax, fully in f32, exact normalization
        m = jnp.max(s, axis=-1, keepdims=True)
        e = jnp.exp(s - m)
        p = (e / jnp.sum(e, axis=-1, keepdims=True)).astype(md)      # (Bt,S,S)

        oh = jnp.einsum("bqk,bkd->bqd", p, vh,
                        preferred_element_type=jnp.float32)          # (Bt,S,dh)
        head_outs.append(oh.astype(md))

    # --- concat heads + ONE wide output matmul + bias ---
    concat = jnp.concatenate(head_outs, axis=-1).reshape(rows, H * dh)
    y = jnp.dot(concat, wo_ref[...], preferred_element_type=jnp.float32)
    y = y.reshape(Bt, S, d_model) + bo_ref[...]                      # f32 bias
    o_ref[...] = y.astype(o_ref.dtype)


def _pick_block_batch(B, S):
    """Batch elements per grid step: amortize per-step overhead (target a decent
    number of projection rows) while keeping >= 2 grid steps when B > 1 so both
    v7x TensorCores get work under dimension_semantics=('parallel',)."""
    bt = max(1, min(B, 256 // max(S, 1)))
    if B >= 2:
        bt = min(bt, B // 2)
    while B % bt:
        bt -= 1
    return bt


def multi_head_attention(query, key, value, mask_3d, params, *,
                         block_batch=None, matmul_dtype=jnp.bfloat16):
    """Pallas implementation of MultiHeadAttention.forward (fully fused)."""
    W_query, W_key, W_value, W_out, b_out = (
        params["W_query"], params["W_key"], params["W_value"],
        params["W_out"], params["b_out"],
    )
    B, S, D = query.shape
    H, _, dh = W_query.shape
    d_model = W_out.shape[0]

    if block_batch is None:
        block_batch = _pick_block_batch(B, S)
    assert B % block_batch == 0
    grid_b = B // block_batch

    # Pack per-head weights into one wide RHS (column block h == head h, matching
    # the torch.chunk/cat ordering) and pre-cast to bf16 so HBM traffic + VMEM
    # footprint are halved and the MXU sees bf16 operands.
    wq_c = jnp.transpose(W_query, (1, 0, 2)).reshape(D, H * dh).astype(matmul_dtype)
    wk_c = jnp.transpose(W_key,   (1, 0, 2)).reshape(D, H * dh).astype(matmul_dtype)
    wv_c = jnp.transpose(W_value, (1, 0, 2)).reshape(D, H * dh).astype(matmul_dtype)
    wo_t = W_out.T.astype(matmul_dtype)                    # (H*dh, d_model)
    bo2d = b_out.reshape(1, d_model).astype(jnp.float32)   # bias stays f32
    mask_f = mask_3d.astype(jnp.float32)

    kernel = functools.partial(_mha_fused_kernel, num_heads=H, d_head=dh,
                               matmul_dtype=matmul_dtype)

    out = pl.pallas_call(
        kernel,
        out_shape=jax.ShapeDtypeStruct((B, S, d_model), query.dtype),
        grid_spec=pltpu.PrefetchScalarGridSpec(
            num_scalar_prefetch=0,
            grid=(grid_b,),
            in_specs=[
                pl.BlockSpec((block_batch, S, D), lambda b: (b, 0, 0)),   # query
                pl.BlockSpec((block_batch, S, D), lambda b: (b, 0, 0)),   # key
                pl.BlockSpec((block_batch, S, D), lambda b: (b, 0, 0)),   # value
                pl.BlockSpec((block_batch, S, S), lambda b: (b, 0, 0)),   # mask
                pl.BlockSpec((D, H * dh), lambda b: (0, 0)),              # W_q (resident)
                pl.BlockSpec((D, H * dh), lambda b: (0, 0)),              # W_k (resident)
                pl.BlockSpec((D, H * dh), lambda b: (0, 0)),              # W_v (resident)
                pl.BlockSpec((H * dh, d_model), lambda b: (0, 0)),        # W_out^T (resident)
                pl.BlockSpec((1, d_model), lambda b: (0, 0)),             # bias (resident)
            ],
            out_specs=pl.BlockSpec((block_batch, S, d_model), lambda b: (b, 0, 0)),
        ),
        compiler_params=pltpu.CompilerParams(
            dimension_semantics=("parallel",),
        ),
    )(query, key, value, mask_f, wq_c, wk_c, wv_c, wo_t, bo2d)

    return out


def init_params(key, d_model, num_heads):
    d_head = d_model // num_heads
    ks = jax.random.split(key, 5)
    scale = 1.0 / math.sqrt(d_model)
    return {
        "W_query": jax.random.normal(ks[0], (num_heads, d_model, d_head), jnp.float32) * scale,
        "W_key":   jax.random.normal(ks[1], (num_heads, d_model, d_head), jnp.float32) * scale,
        "W_value": jax.random.normal(ks[2], (num_heads, d_model, d_head), jnp.float32) * scale,
        # nn.Linear(num_heads*d_head, d_model): weight (d_model, num_heads*d_head)
        "W_out":   jax.random.normal(ks[3], (d_model, num_heads * d_head), jnp.float32) * scale,
        "b_out":   jax.random.normal(ks[4], (d_model,), jnp.float32) * scale,
    }


def _reference(query, key, value, mask_3d, params, matmul_dtype=jnp.float32):
    """Pure-JAX reference mirroring the PyTorch forward.  With
    matmul_dtype=bf16 it casts matmul operands at exactly the same points as
    the kernel (f32 accumulation everywhere), giving a precision-matched
    reference; with f32 it is the exact PyTorch-semantics reference."""
    W_q, W_k, W_v = params["W_query"], params["W_key"], params["W_value"]
    H, D, dh = W_q.shape
    md = matmul_dtype
    f32 = jnp.float32
    B, S, _ = query.shape

    q = jnp.einsum("bsd,hde->hbse", query.astype(md), W_q.astype(md),
                   preferred_element_type=f32) / math.sqrt(dh)
    k = jnp.einsum("bsd,hde->hbse", key.astype(md), W_k.astype(md),
                   preferred_element_type=f32)
    v = jnp.einsum("bsd,hde->hbse", value.astype(md), W_v.astype(md),
                   preferred_element_type=f32)

    scores = jnp.einsum("hbqe,hbke->hbqk", q.astype(md), k.astype(md),
                        preferred_element_type=f32)
    scores = scores + jnp.where(mask_3d[None] > 0, f32(0.0), f32(-1e9))
    m = jnp.max(scores, axis=-1, keepdims=True)
    e = jnp.exp(scores - m)
    p = e / jnp.sum(e, axis=-1, keepdims=True)

    out = jnp.einsum("hbqk,hbke->hbqe", p.astype(md), v.astype(md),
                     preferred_element_type=f32)            # (H, B, S, dh)
    concat = jnp.transpose(out.astype(md), (1, 2, 0, 3)).reshape(B, S, H * dh)
    y = jnp.einsum("bsk,dk->bsd", concat, params["W_out"].astype(md),
                   preferred_element_type=f32)
    return y + params["b_out"]


if __name__ == "__main__":
    d_model, num_heads = 32, 4
    batch, seq = 2, 8

    root = jax.random.PRNGKey(0)
    k_p, k_q, k_k, k_v = jax.random.split(root, 4)
    params = init_params(k_p, d_model, num_heads)

    query = jax.random.normal(k_q, (batch, seq, d_model), jnp.float32)
    key = jax.random.normal(k_k, (batch, seq, d_model), jnp.float32)
    value = jax.random.normal(k_v, (batch, seq, d_model), jnp.float32)
    # simple causal mask (1 = keep, 0 = masked), broadcast to each batch element
    mask_3d = jnp.tril(jnp.ones((seq, seq), jnp.float32))[None].repeat(batch, axis=0)

    out = multi_head_attention(query, key, value, mask_3d, params)
    jax.block_until_ready(out)
    assert out.shape == (batch, seq, d_model)

    # 1) Algorithmic correctness: compare against a reference that uses the
    #    same bf16 matmul operands / f32 accumulation -> differences are only
    #    reduction-order noise, so the tolerance can stay tight.
    ref_bf16 = _reference(query, key, value, mask_3d, params, matmul_dtype=jnp.bfloat16)
    err_exact = float(jnp.max(jnp.abs(out - ref_bf16)))
    assert err_exact < 2e-3, f"mismatch vs precision-matched reference: {err_exact}"

    # 2) Precision sanity: compare against the full-f32 PyTorch-semantics
    #    reference; bf16 MXU operands give ~1e-2 typical absolute error at
    #    these value magnitudes (~1), so allow a few x 1e-2 of headroom.
    ref_f32 = _reference(query, key, value, mask_3d, params, matmul_dtype=jnp.float32)
    err_f32 = float(jnp.max(jnp.abs(out - ref_f32)))
    assert err_f32 < 1e-1, f"bf16 precision drift too large vs f32 reference: {err_f32}"

    print("KERNEL_OK")
</pallas_src>

<mosaic_0001>
module attributes {stable_mosaic.version = 11 : i64} {
  func.func @_mha_fused_kernel(%arg0: i32, %arg1: memref<1x8x32xf32, #tpu.memory_space<vmem>>, %arg2: memref<1x8x32xf32, #tpu.memory_space<vmem>>, %arg3: memref<1x8x32xf32, #tpu.memory_space<vmem>>, %arg4: memref<1x8x8xf32, #tpu.memory_space<vmem>>, %arg5: memref<32x32xbf16, #tpu.memory_space<vmem>>, %arg6: memref<32x32xbf16, #tpu.memory_space<vmem>>, %arg7: memref<32x32xbf16, #tpu.memory_space<vmem>>, %arg8: memref<32x32xbf16, #tpu.memory_space<vmem>>, %arg9: memref<1x32xf32, #tpu.memory_space<vmem>>, %arg10: memref<1x8x32xf32, #tpu.memory_space<vmem>>) attributes {dimension_semantics = [#tpu.dimension_semantics<parallel>], iteration_bounds = array<i64: 2>, scalar_prefetch = 0 : i64, scratch_operands = 0 : i64, tpu.core_type = #tpu.core_type<tc>, window_params = [{transform_indices = @transform_0, window_bounds = array<i64: 1, 8, 32>}, {transform_indices = @transform_1, window_bounds = array<i64: 1, 8, 32>}, {transform_indices = @transform_2, window_bounds = array<i64: 1, 8, 32>}, {transform_indices = @transform_3, window_bounds = array<i64: 1, 8, 8>}, {pipeline_mode = #tpu.pipeline_mode<synchronous>, transform_indices = @transform_4, window_bounds = array<i64: 32, 32>}, {pipeline_mode = #tpu.pipeline_mode<synchronous>, transform_indices = @transform_5, window_bounds = array<i64: 32, 32>}, {pipeline_mode = #tpu.pipeline_mode<synchronous>, transform_indices = @transform_6, window_bounds = array<i64: 32, 32>}, {pipeline_mode = #tpu.pipeline_mode<synchronous>, transform_indices = @transform_7, window_bounds = array<i64: 32, 32>}, {pipeline_mode = #tpu.pipeline_mode<synchronous>, transform_indices = @transform_8, window_bounds = array<i64: 1, 32>}, {transform_indices = @transform_9, window_bounds = array<i64: 1, 8, 32>}]} {
    %c0 = arith.constant 0 : index
    %c0_0 = arith.constant 0 : index
    %c0_1 = arith.constant 0 : index
    %0 = vector.load %arg1[%c0, %c0_0, %c0_1] : memref<1x8x32xf32, #tpu.memory_space<vmem>>, vector<1x8x32xf32>
    %1 = vector.shape_cast %0 : vector<1x8x32xf32> to vector<8x32xf32>
    %2 = arith.truncf %1 : vector<8x32xf32> to vector<8x32xbf16>
    %c0_2 = arith.constant 0 : index
    %c0_3 = arith.constant 0 : index
    %c0_4 = arith.constant 0 : index
    %3 = vector.load %arg2[%c0_2, %c0_3, %c0_4] : memref<1x8x32xf32, #tpu.memory_space<vmem>>, vector<1x8x32xf32>
    %4 = vector.shape_cast %3 : vector<1x8x32xf32> to vector<8x32xf32>
    %5 = arith.truncf %4 : vector<8x32xf32> to vector<8x32xbf16>
    %c0_5 = arith.constant 0 : index
    %c0_6 = arith.constant 0 : index
    %c0_7 = arith.constant 0 : index
    %6 = vector.load %arg3[%c0_5, %c0_6, %c0_7] : memref<1x8x32xf32, #tpu.memory_space<vmem>>, vector<1x8x32xf32>
    %7 = vector.shape_cast %6 : vector<1x8x32xf32> to vector<8x32xf32>
    %8 = arith.truncf %7 : vector<8x32xf32> to vector<8x32xbf16>
    %c0_8 = arith.constant 0 : index
    %c0_9 = arith.constant 0 : index
    %9 = vector.load %arg5[%c0_8, %c0_9] : memref<32x32xbf16, #tpu.memory_space<vmem>>, vector<32x32xbf16>
    %cst = arith.constant dense<0.000000e+00> : vector<8x32xf32>
    %10 = tpu.matmul %2, %9, %cst {dimension_numbers = #tpu.dot_dimension_numbers<[1], [0], [0], [1], [0, 0, 1, 1], [], []>} : vector<8x32xbf16>, vector<32x32xbf16>, vector<8x32xf32> -> vector<8x32xf32>
    %cst_10 = arith.constant 0.353553385 : f32
    %11 = vector.broadcast %cst_10 : f32 to vector<8x32xf32>
    %12 = arith.mulf %10, %11 : vector<8x32xf32>
    %c0_11 = arith.constant 0 : index
    %c0_12 = arith.constant 0 : index
    %13 = vector.load %arg6[%c0_11, %c0_12] : memref<32x32xbf16, #tpu.memory_space<vmem>>, vector<32x32xbf16>
    %cst_13 = arith.constant dense<0.000000e+00> : vector<8x32xf32>
    %14 = tpu.matmul %5, %13, %cst_13 {dimension_numbers = #tpu.dot_dimension_numbers<[1], [0], [0], [1], [0, 0, 1, 1], [], []>} : vector<8x32xbf16>, vector<32x32xbf16>, vector<8x32xf32> -> vector<8x32xf32>
    %c0_14 = arith.constant 0 : index
    %c0_15 = arith.constant 0 : index
    %15 = vector.load %arg7[%c0_14, %c0_15] : memref<32x32xbf16, #tpu.memory_space<vmem>>, vector<32x32xbf16>
    %cst_16 = arith.constant dense<0.000000e+00> : vector<8x32xf32>
    %16 = tpu.matmul %8, %15, %cst_16 {dimension_numbers = #tpu.dot_dimension_numbers<[1], [0], [0], [1], [0, 0, 1, 1], [], []>} : vector<8x32xbf16>, vector<32x32xbf16>, vector<8x32xf32> -> vector<8x32xf32>
    %17 = vector.shape_cast %12 : vector<8x32xf32> to vector<1x8x32xf32>
    %18 = arith.truncf %17 : vector<1x8x32xf32> to vector<1x8x32xbf16>
    %19 = vector.shape_cast %14 : vector<8x32xf32> to vector<1x8x32xf32>
    %20 = arith.truncf %19 : vector<1x8x32xf32> to vector<1x8x32xbf16>
    %21 = vector.shape_cast %16 : vector<8x32xf32> to vector<1x8x32xf32>
    %22 = arith.truncf %21 : vector<1x8x32xf32> to vector<1x8x32xbf16>
    %c0_17 = arith.constant 0 : index
    %c0_18 = arith.constant 0 : index
    %c0_19 = arith.constant 0 : index
    %23 = vector.load %arg4[%c0_17, %c0_18, %c0_19] : memref<1x8x8xf32, #tpu.memory_space<vmem>>, vector<1x8x8xf32>
    %cst_20 = arith.constant 0.000000e+00 : f32
    %24 = vector.broadcast %cst_20 : f32 to vector<1x8x8xf32>
    %25 = arith.cmpf ogt, %23, %24 : vector<1x8x8xf32>
    %cst_21 = arith.constant 0.000000e+00 : f32
    %cst_22 = arith.constant -1.000000e+09 : f32
    %26 = vector.broadcast %cst_21 : f32 to vector<1x8x8xf32>
    %27 = vector.broadcast %cst_22 : f32 to vector<1x8x8xf32>
    %28 = arith.select %25, %26, %27 : vector<1x8x8xi1>, vector<1x8x8xf32>
    %29 = vector.extract_strided_slice %18 {offsets = [0, 0, 0], sizes = [1, 8, 8], strides = [1, 1, 1]} : vector<1x8x32xbf16> to vector<1x8x8xbf16>
    %30 = vector.extract_strided_slice %20 {offsets = [0, 0, 0], sizes = [1, 8, 8], strides = [1, 1, 1]} : vector<1x8x32xbf16> to vector<1x8x8xbf16>
    %31 = vector.extract_strided_slice %22 {offsets = [0, 0, 0], sizes = [1, 8, 8], strides = [1, 1, 1]} : vector<1x8x32xbf16> to vector<1x8x8xbf16>
    "tpu.trace_start"() <{level = 10 : i32, message = "bqd,bkd->bqk"}> : () -> ()
    %cst_23 = arith.constant dense<0.000000e+00> : vector<1x8x8xf32>
    %32 = tpu.matmul %29, %30, %cst_23 {dimension_numbers = #tpu.dot_dimension_numbers<[2], [2], [1], [1], [0, 0, 0, 1, 1, 1], [0], [0]>} : vector<1x8x8xbf16>, vector<1x8x8xbf16>, vector<1x8x8xf32> -> vector<1x8x8xf32>
    "tpu.trace_stop"() : () -> ()
    %33 = arith.addf %32, %28 : vector<1x8x8xf32>
    %cst_24 = arith.constant dense<0xFF800000> : vector<1x8xf32>
    %34 = vector.multi_reduction <maximumf>, %33, %cst_24 [2] : vector<1x8x8xf32> to vector<1x8xf32>
    %35 = vector.shape_cast %34 : vector<1x8xf32> to vector<1x8x1xf32>
    %36 = vector.broadcast %35 : vector<1x8x1xf32> to vector<1x8x8xf32>
    %37 = arith.subf %33, %36 : vector<1x8x8xf32>
    %38 = math.exp %37 : vector<1x8x8xf32>
    %cst_25 = arith.constant dense<0.000000e+00> : vector<1x8xf32>
    %39 = vector.multi_reduction <add>, %38, %cst_25 [2] : vector<1x8x8xf32> to vector<1x8xf32>
    %40 = vector.shape_cast %39 : vector<1x8xf32> to vector<1x8x1xf32>
    %41 = vector.broadcast %40 : vector<1x8x1xf32> to vector<1x8x8xf32>
    %42 = arith.divf %38, %41 : vector<1x8x8xf32>
    %43 = arith.truncf %42 : vector<1x8x8xf32> to vector<1x8x8xbf16>
    "tpu.trace_start"() <{level = 10 : i32, message = "bqk,bkd->bqd"}> : () -> ()
    %cst_26 = arith.constant dense<0.000000e+00> : vector<1x8x8xf32>
    %44 = tpu.matmul %43, %31, %cst_26 {dimension_numbers = #tpu.dot_dimension_numbers<[2], [1], [1], [2], [0, 0, 0, 1, 1, 2], [0], [0]>} : vector<1x8x8xbf16>, vector<1x8x8xbf16>, vector<1x8x8xf32> -> vector<1x8x8xf32>
    "tpu.trace_stop"() : () -> ()
    %45 = arith.truncf %44 : vector<1x8x8xf32> to vector<1x8x8xbf16>
    %46 = vector.extract_strided_slice %18 {offsets = [0, 0, 8], sizes = [1, 8, 8], strides = [1, 1, 1]} : vector<1x8x32xbf16> to vector<1x8x8xbf16>
    %47 = vector.extract_strided_slice %20 {offsets = [0, 0, 8], sizes = [1, 8, 8], strides = [1, 1, 1]} : vector<1x8x32xbf16> to vector<1x8x8xbf16>
    %48 = vector.extract_strided_slice %22 {offsets = [0, 0, 8], sizes = [1, 8, 8], strides = [1, 1, 1]} : vector<1x8x32xbf16> to vector<1x8x8xbf16>
    "tpu.trace_start"() <{level = 10 : i32, message = "bqd,bkd->bqk"}> : () -> ()
    %cst_27 = arith.constant dense<0.000000e+00> : vector<1x8x8xf32>
    %49 = tpu.matmul %46, %47, %cst_27 {dimension_numbers = #tpu.dot_dimension_numbers<[2], [2], [1], [1], [0, 0, 0, 1, 1, 1], [0], [0]>} : vector<1x8x8xbf16>, vector<1x8x8xbf16>, vector<1x8x8xf32> -> vector<1x8x8xf32>
    "tpu.trace_stop"() : () -> ()
    %50 = arith.addf %49, %28 : vector<1x8x8xf32>
    %cst_28 = arith.constant dense<0xFF800000> : vector<1x8xf32>
    %51 = vector.multi_reduction <maximumf>, %50, %cst_28 [2] : vector<1x8x8xf32> to vector<1x8xf32>
    %52 = vector.shape_cast %51 : vector<1x8xf32> to vector<1x8x1xf32>
    %53 = vector.broadcast %52 : vector<1x8x1xf32> to vector<1x8x8xf32>
    %54 = arith.subf %50, %53 : vector<1x8x8xf32>
    %55 = math.exp %54 : vector<1x8x8xf32>
    %cst_29 = arith.constant dense<0.000000e+00> : vector<1x8xf32>
    %56 = vector.multi_reduction <add>, %55, %cst_29 [2] : vector<1x8x8xf32> to vector<1x8xf32>
    %57 = vector.shape_cast %56 : vector<1x8xf32> to vector<1x8x1xf32>
    %58 = vector.broadcast %57 : vector<1x8x1xf32> to vector<1x8x8xf32>
    %59 = arith.divf %55, %58 : vector<1x8x8xf32>
    %60 = arith.truncf %59 : vector<1x8x8xf32> to vector<1x8x8xbf16>
    "tpu.trace_start"() <{level = 10 : i32, message = "bqk,bkd->bqd"}> : () -> ()
    %cst_30 = arith.constant dense<0.000000e+00> : vector<1x8x8xf32>
    %61 = tpu.matmul %60, %48, %cst_30 {dimension_numbers = #tpu.dot_dimension_numbers<[2], [1], [1], [2], [0, 0, 0, 1, 1, 2], [0], [0]>} : vector<1x8x8xbf16>, vector<1x8x8xbf16>, vector<1x8x8xf32> -> vector<1x8x8xf32>
    "tpu.trace_stop"() : () -> ()
    %62 = arith.truncf %61 : vector<1x8x8xf32> to vector<1x8x8xbf16>
    %63 = vector.extract_strided_slice %18 {offsets = [0, 0, 16], sizes = [1, 8, 8], strides = [1, 1, 1]} : vector<1x8x32xbf16> to vector<1x8x8xbf16>
    %64 = vector.extract_strided_slice %20 {offsets = [0, 0, 16], sizes = [1, 8, 8], strides = [1, 1, 1]} : vector<1x8x32xbf16> to vector<1x8x8xbf16>
    %65 = vector.extract_strided_slice %22 {offsets = [0, 0, 16], sizes = [1, 8, 8], strides = [1, 1, 1]} : vector<1x8x32xbf16> to vector<1x8x8xbf16>
    "tpu.trace_start"() <{level = 10 : i32, message = "bqd,bkd->bqk"}> : () -> ()
    %cst_31 = arith.constant dense<0.000000e+00> : vector<1x8x8xf32>
    %66 = tpu.matmul %63, %64, %cst_31 {dimension_numbers = #tpu.dot_dimension_numbers<[2], [2], [1], [1], [0, 0, 0, 1, 1, 1], [0], [0]>} : vector<1x8x8xbf16>, vector<1x8x8xbf16>, vector<1x8x8xf32> -> vector<1x8x8xf32>
    "tpu.trace_stop"() : () -> ()
    %67 = arith.addf %66, %28 : vector<1x8x8xf32>
    %cst_32 = arith.constant dense<0xFF800000> : vector<1x8xf32>
    %68 = vector.multi_reduction <maximumf>, %67, %cst_32 [2] : vector<1x8x8xf32> to vector<1x8xf32>
    %69 = vector.shape_cast %68 : vector<1x8xf32> to vector<1x8x1xf32>
    %70 = vector.broadcast %69 : vector<1x8x1xf32> to vector<1x8x8xf32>
    %71 = arith.subf %67, %70 : vector<1x8x8xf32>
    %72 = math.exp %71 : vector<1x8x8xf32>
    %cst_33 = arith.constant dense<0.000000e+00> : vector<1x8xf32>
    %73 = vector.multi_reduction <add>, %72, %cst_33 [2] : vector<1x8x8xf32> to vector<1x8xf32>
    %74 = vector.shape_cast %73 : vector<1x8xf32> to vector<1x8x1xf32>
    %75 = vector.broadcast %74 : vector<1x8x1xf32> to vector<1x8x8xf32>
    %76 = arith.divf %72, %75 : vector<1x8x8xf32>
    %77 = arith.truncf %76 : vector<1x8x8xf32> to vector<1x8x8xbf16>
    "tpu.trace_start"() <{level = 10 : i32, message = "bqk,bkd->bqd"}> : () -> ()
    %cst_34 = arith.constant dense<0.000000e+00> : vector<1x8x8xf32>
    %78 = tpu.matmul %77, %65, %cst_34 {dimension_numbers = #tpu.dot_dimension_numbers<[2], [1], [1], [2], [0, 0, 0, 1, 1, 2], [0], [0]>} : vector<1x8x8xbf16>, vector<1x8x8xbf16>, vector<1x8x8xf32> -> vector<1x8x8xf32>
    "tpu.trace_stop"() : () -> ()
    %79 = arith.truncf %78 : vector<1x8x8xf32> to vector<1x8x8xbf16>
    %80 = vector.extract_strided_slice %18 {offsets = [0, 0, 24], sizes = [1, 8, 8], strides = [1, 1, 1]} : vector<1x8x32xbf16> to vector<1x8x8xbf16>
    %81 = vector.extract_strided_slice %20 {offsets = [0, 0, 24], sizes = [1, 8, 8], strides = [1, 1, 1]} : vector<1x8x32xbf16> to vector<1x8x8xbf16>
    %82 = vector.extract_strided_slice %22 {offsets = [0, 0, 24], sizes = [1, 8, 8], strides = [1, 1, 1]} : vector<1x8x32xbf16> to vector<1x8x8xbf16>
    "tpu.trace_start"() <{level = 10 : i32, message = "bqd,bkd->bqk"}> : () -> ()
    %cst_35 = arith.constant dense<0.000000e+00> : vector<1x8x8xf32>
    %83 = tpu.matmul %80, %81, %cst_35 {dimension_numbers = #tpu.dot_dimension_numbers<[2], [2], [1], [1], [0, 0, 0, 1, 1, 1], [0], [0]>} : vector<1x8x8xbf16>, vector<1x8x8xbf16>, vector<1x8x8xf32> -> vector<1x8x8xf32>
    "tpu.trace_stop"() : () -> ()
    %84 = arith.addf %83, %28 : vector<1x8x8xf32>
    %cst_36 = arith.constant dense<0xFF800000> : vector<1x8xf32>
    %85 = vector.multi_reduction <maximumf>, %84, %cst_36 [2] : vector<1x8x8xf32> to vector<1x8xf32>
    %86 = vector.shape_cast %85 : vector<1x8xf32> to vector<1x8x1xf32>
    %87 = vector.broadcast %86 : vector<1x8x1xf32> to vector<1x8x8xf32>
    %88 = arith.subf %84, %87 : vector<1x8x8xf32>
    %89 = math.exp %88 : vector<1x8x8xf32>
    %cst_37 = arith.constant dense<0.000000e+00> : vector<1x8xf32>
    %90 = vector.multi_reduction <add>, %89, %cst_37 [2] : vector<1x8x8xf32> to vector<1x8xf32>
    %91 = vector.shape_cast %90 : vector<1x8xf32> to vector<1x8x1xf32>
    %92 = vector.broadcast %91 : vector<1x8x1xf32> to vector<1x8x8xf32>
    %93 = arith.divf %89, %92 : vector<1x8x8xf32>
    %94 = arith.truncf %93 : vector<1x8x8xf32> to vector<1x8x8xbf16>
    "tpu.trace_start"() <{level = 10 : i32, message = "bqk,bkd->bqd"}> : () -> ()
    %cst_38 = arith.constant dense<0.000000e+00> : vector<1x8x8xf32>
    %95 = tpu.matmul %94, %82, %cst_38 {dimension_numbers = #tpu.dot_dimension_numbers<[2], [1], [1], [2], [0, 0, 0, 1, 1, 2], [0], [0]>} : vector<1x8x8xbf16>, vector<1x8x8xbf16>, vector<1x8x8xf32> -> vector<1x8x8xf32>
    "tpu.trace_stop"() : () -> ()
    %96 = arith.truncf %95 : vector<1x8x8xf32> to vector<1x8x8xbf16>
    %97 = tpu.concatenate %45, %62, %79, %96 in 2 : vector<1x8x8xbf16>, vector<1x8x8xbf16>, vector<1x8x8xbf16>, vector<1x8x8xbf16> -> vector<1x8x32xbf16>
    %98 = vector.shape_cast %97 : vector<1x8x32xbf16> to vector<8x32xbf16>
    %c0_39 = arith.constant 0 : index
    %c0_40 = arith.constant 0 : index
    %99 = vector.load %arg8[%c0_39, %c0_40] : memref<32x32xbf16, #tpu.memory_space<vmem>>, vector<32x32xbf16>
    %cst_41 = arith.constant dense<0.000000e+00> : vector<8x32xf32>
    %100 = tpu.matmul %98, %99, %cst_41 {dimension_numbers = #tpu.dot_dimension_numbers<[1], [0], [0], [1], [0, 0, 1, 1], [], []>} : vector<8x32xbf16>, vector<32x32xbf16>, vector<8x32xf32> -> vector<8x32xf32>
    %101 = vector.shape_cast %100 : vector<8x32xf32> to vector<1x8x32xf32>
    %c0_42 = arith.constant 0 : index
    %c0_43 = arith.constant 0 : index
    %102 = vector.load %arg9[%c0_42, %c0_43] : memref<1x32xf32, #tpu.memory_space<vmem>>, vector<1x32xf32>
    %103 = vector.shape_cast %102 : vector<1x32xf32> to vector<1x1x32xf32>
    %104 = vector.broadcast %103 : vector<1x1x32xf32> to vector<1x8x32xf32>
    %105 = arith.addf %101, %104 : vector<1x8x32xf32>
    %c0_44 = arith.constant 0 : index
    %c0_45 = arith.constant 0 : index
    %c0_46 = arith.constant 0 : index
    %106 = vector.load %arg10[%c0_44, %c0_45, %c0_46] : memref<1x8x32xf32, #tpu.memory_space<vmem>>, vector<1x8x32xf32>
    tpu.vector_store %arg10[%c0_44, %c0_45, %c0_46], %105 {strides = array<i32>} : memref<1x8x32xf32, #tpu.memory_space<vmem>>, vector<1x8x32xf32>,
    return
  }
  func.func @transform_0(%arg0: i32) -> (i32, i32, i32) {
    %c0_i32 = arith.constant 0 : i32
    %c0_i32_0 = arith.constant 0 : i32
    %c0_i32_1 = arith.constant 0 : i32
    return %arg0, %c0_i32, %c0_i32_0 : i32, i32, i32
  }
  func.func @transform_1(%arg0: i32) -> (i32, i32, i32) {
    %c0_i32 = arith.constant 0 : i32
    %c0_i32_0 = arith.constant 0 : i32
    %c0_i32_1 = arith.constant 0 : i32
    return %arg0, %c0_i32, %c0_i32_0 : i32, i32, i32
  }
  func.func @transform_2(%arg0: i32) -> (i32, i32, i32) {
    %c0_i32 = arith.constant 0 : i32
    %c0_i32_0 = arith.constant 0 : i32
    %c0_i32_1 = arith.constant 0 : i32
    return %arg0, %c0_i32, %c0_i32_0 : i32, i32, i32
  }
  func.func @transform_3(%arg0: i32) -> (i32, i32, i32) {
    %c0_i32 = arith.constant 0 : i32
    %c0_i32_0 = arith.constant 0 : i32
    %c0_i32_1 = arith.constant 0 : i32
    return %arg0, %c0_i32, %c0_i32_0 : i32, i32, i32
  }
  func.func @transform_4(%arg0: i32) -> (i32, i32) {
    %c0_i32 = arith.constant 0 : i32
    %c0_i32_0 = arith.constant 0 : i32
    %c0_i32_1 = arith.constant 0 : i32
    return %c0_i32, %c0_i32_0 : i32, i32
  }
  func.func @transform_5(%arg0: i32) -> (i32, i32) {
    %c0_i32 = arith.constant 0 : i32
    %c0_i32_0 = arith.constant 0 : i32
    %c0_i32_1 = arith.constant 0 : i32
    return %c0_i32, %c0_i32_0 : i32, i32
  }
  func.func @transform_6(%arg0: i32) -> (i32, i32) {
    %c0_i32 = arith.constant 0 : i32
    %c0_i32_0 = arith.constant 0 : i32
    %c0_i32_1 = arith.constant 0 : i32
    return %c0_i32, %c0_i32_0 : i32, i32
  }
  func.func @transform_7(%arg0: i32) -> (i32, i32) {
    %c0_i32 = arith.constant 0 : i32
    %c0_i32_0 = arith.constant 0 : i32
    %c0_i32_1 = arith.constant 0 : i32
    return %c0_i32, %c0_i32_0 : i32, i32
  }
  func.func @transform_8(%arg0: i32) -> (i32, i32) {
    %c0_i32 = arith.constant 0 : i32
    %c0_i32_0 = arith.constant 0 : i32
    %c0_i32_1 = arith.constant 0 : i32
    return %c0_i32, %c0_i32_0 : i32, i32
  }
  func.func @transform_9(%arg0: i32) -> (i32, i32, i32) {
    %c0_i32 = arith.constant 0 : i32
    %c0_i32_0 = arith.constant 0 : i32
    %c0_i32_1 = arith.constant 0 : i32
    return %arg0, %c0_i32, %c0_i32_0 : i32, i32, i32
  }
}

</mosaic_0001>

<bundles_post_ra>
// kernel: tpu_custom_call.1
= control target key start
LH: loop header
LB: loop body
LE: loop exit
PB: predicated region body
PF: predicated region fallthrough
CT: control target
= control target key end

     0   :  { %s2500_s0 = inlined_call_operand.hbm [shape: f32[2,8,32], index: 0, kind: input, shape index: {}]   ;;  %s2501_s1 = inlined_call_operand.hbm [shape: f32[2,8,32], index: 1, kind: input, shape index: {}]   ;;  %s2502_s2 = inlined_call_operand.hbm [shape: f32[2,8,32], index: 2, kind: input, shape index: {}]   ;;  %s2503_s3 = inlined_call_operand.hbm [shape: f32[2,8,8], index: 3, kind: input, shape index: {}]   ;;  %s2504_s4 = inlined_call_operand.hbm [shape: bf16[32,32], index: 4, kind: input, shape index: {}]   ;;  %s2505_s5 = inlined_call_operand.vmem [shape: bf16[32,32], index: 5, kind: input, shape index: {}]   ;;  %s2506_s6 = inlined_call_operand.hbm [shape: bf16[32,32], index: 6, kind: input, shape index: {}]   ;;  %s2507_s7 = inlined_call_operand.hbm [shape: bf16[32,32], index: 7, kind: input, shape index: {}]   ;;  %s2508_s8 = inlined_call_operand.vmem [shape: f32[1,32], index: 8, kind: input, shape index: {}]   ;;  %s2509_s9 = inlined_call_operand.hbm [shape: f32[2,8,32], index: 9, kind: output, shape index: {}]  }
   0x1   :  { %2528 = sst [smem:[#allocation25_spill]] %s2501_s1 }
   0x2   :  { %2529 = sst [smem:[#allocation26_spill]] %s2504_s4 }
   0x3   :  { %2530 = sst [smem:[#allocation27_spill]] %s2506_s6 }
   0x4   :  { %2531 = sst [smem:[#allocation28_spill]] %s2509_s9 }
   0x5   :  { %14 = vsyncpa [#allocation3], 0 }
   0x6   :  { %16 = vsyncpa [#allocation3 + $0x1], 0 }
   0x7   :  { %17 = vsyncpa [#allocation6], 0 }
   0x8   :  { %19 = vsyncpa [#allocation6 + $0x1], 0 }
   0x9   :  { %20 = vsyncpa [#allocation9], 0 }
   0xa   :  { %22 = vsyncpa [#allocation9 + $0x1], 0 }
   0xb   :  { %23 = vsyncpa [#allocation12], 0 }
   0xc   :  { %24 = vsyncpa [#allocation4], 0 }
   0xd   :  { %26 = vsyncpa [#allocation4 + $0x1], 0  ;;  %s2037_s30 = smov 0   ;;  %s2039_s10 = smov 0  }
   0xe   :  { %s2041_s11 = smov 0   ;;  %s2043_s12 = smov 0  }
   0xf LB: > { %2532 = sst [smem:[#allocation21_spill]] %s1954_s30  ;;  %s2058_s13 = sadd.s32 4294967295, %s1966_s12   ;;  %s1966_s12 = sphi %s2043_s12, %s2569_s12   ;;  %s1962_s11 = sphi %s2041_s11, %s2573_s11   ;;  %s1958_s10 = sphi %s2039_s10, %s2572_s10   ;;  %s1954_s30 = sphi %s2037_s30, %s2571_s30  }
  0x10   : > { %s1397_s14 = sadd.s32 4294967294, %s1966_s12   ;;  %p52_p0 = scmp.ne.s32.totalorder %s1958_s10, %s1954_s30 }
  0x11   : > { %p2510_p1 = scmp.eq.s32.totalorder %s2058_s13, 0  ;;  %p265_p3 = scmp.eq.s32.totalorder %s1397_s14, 1 }
  0x12   : > { %p1398_p5 = scmp.ge.s32.totalorder %s1966_s12, 1  ;;  %p272_p7 = scmp.lt.s32.totalorder %s1966_s12, 3 }
  0x13   : > { %p2067_p4 = por %p2510_p1, %p52_p0  ;;  %p2072_p6 = por %p265_p3, %p52_p0 }
  0x14   : > { %p2077_p8 = pnand %p1398_p5, %p272_p7  ;;  %s1968_s18 = smov [#allocation10]  }
  0x15   : > { %s2533_s15 = scalar_select %p2067_p4, 1, 0 }
  0x16   : > { %s2534_s16 = scalar_select %p2072_p6, 1, 0 }
  0x17   : > { %s2536_s17 = scalar_select %p2077_p8, 1, 0 }
  0x18   : > { %2535 = sst [smem:[#allocation22_spill]] %s2534_s16  ;;  %s284_s19 = sshll.u32 %s1968_s18, 4  ;;  %s2081_s19 = int_to_ptr.vmem [resolvable:$true] %s284_s19 }
  0x19   : > { %p1575_p9 = pneg %p2077_p8  ;;  %s1969_s21 = smov [#allocation11]  }
  0x1a   : > { %s300_s22 = sshll.u32 %s1969_s21, 4  ;;  %s2538_s4 = sld [smem:[#allocation26_spill]]  ;;  %s2092_s22 = int_to_ptr.vmem [resolvable:$true] %s300_s22 }
  0x1b   : > { %p2088_p11 = pnand %p1575_p9, %p2510_p1 }
  0x1d   : > { %s2537_s20 = scalar_select %p2088_p11, 1, 0 }
  0x1e   : > { %p2102_p13 = pneg %p2088_p11 }
  0x20   : > { %s1680_s25 = scalar_lea.hbm %s2538_s4, 256 }
  0x21   : > { %p1681_p12 = scmp.ne.s32.totalorder %s2538_s4, %s1680_s25  ;;  %p1687_p5 = scmp.lt.u32.totalorder %s1680_s25, %s2538_s4 }
  0x22   : > { %s2539_s28 = scalar_select %p2102_p13, 1, 0 }
  0x23   : > { %p1683_p0 = pnand %p2102_p13, %p1681_p12 }
  0x25   : > { %p1684_p3 = pneg %p1683_p0 }
  0x27   : > { %p1689_p7 = pnand %p1687_p5, %p1684_p3 }
  0x29   : > { %1692 = shalt.err (!%p1689_p7)
}
  0x2a   : > { %s1693_s18 = scalar_lea.vmem %s2081_s19, 256  ;;  %p1701_p2 = scmp.lt.s32.totalorder %s2081_s19, %s2081_s19 }
  0x2b   : > { %p1694_p9 = scmp.ne.s32.totalorder %s2081_s19, %s1693_s18  ;;  %p1702_p6 = scmp.lt.s32.totalorder %s1693_s18, %s1693_s18 }
  0x2d   : > { %p1696_p10 = pnand %p1694_p9, %p2102_p13  ;;  %p1703_p12 = por %p1702_p6, %p1701_p2 }
  0x2f   : > { %p1697_p1 = pneg %p1696_p10 }
  0x31   : > { %p1704_p0 = pnand %p1703_p12, %p1697_p1 }
  0x33   : > { %1707 = shalt.err (!%p1704_p0)
}
  0x34   : > { %s2514_s21 = smov 64   ;;  %s2515_s23 = smov 4  }
  0x35   : > { %1578 = dma.hbm_to_vmem [thread:$0]  (!%p2088_p11), %s2538_s4, 256, %s2081_s19, [#allocation9], %s2514_s21, %s2514_s21, %s2515_s23  }
  0x36   : > { %s2540_s6 = sld [smem:[#allocation27_spill]] }
  0x3c   : > { %s1708_s29 = scalar_lea.hbm %s2540_s6, 256 }
  0x3d   : > { %p1709_p1 = scmp.ne.s32.totalorder %s2540_s6, %s1708_s29  ;;  %p1715_p10 = scmp.lt.u32.totalorder %s1708_s29, %s2540_s6 }
  0x3f   : > { %p1711_p2 = pnand %p1709_p1, %p2102_p13 }
  0x41   : > { %p1712_p6 = pneg %p1711_p2 }
  0x43   : > { %p1717_p3 = pnand %p1715_p10, %p1712_p6 }
  0x45   : > { %1720 = shalt.err (!%p1717_p3)
}
  0x46   : > { %s1721_s19 = scalar_lea.vmem %s2092_s22, 256  ;;  %p1729_p12 = scmp.lt.s32.totalorder %s2092_s22, %s2092_s22 }
  0x47   : > { %p1722_p5 = scmp.ne.s32.totalorder %s2092_s22, %s1721_s19  ;;  %p1730_p0 = scmp.lt.s32.totalorder %s1721_s19, %s1721_s19 }
  0x49   : > { %p1724_p7 = pnand %p1722_p5, %p2102_p13  ;;  %p1731_p1 = por %p1730_p0, %p1729_p12 }
  0x4b   : > { %p1725_p9 = pneg %p1724_p7 }
  0x4d   : > { %p1732_p2 = pnand %p1731_p1, %p1725_p9 }
  0x4f   : > { %1735 = shalt.err (!%p1732_p2)
}
  0x50   : > { %1581 = dma.hbm_to_vmem [thread:$0]  (!%p2088_p11), %s2540_s6, 256, %s2092_s22, [#allocation12], %s2514_s21, %s2514_s21, %s2515_s23  }
  0x51   : > { %s2153_s24 = sadd.s32 1, %s1966_s12   ;;  %s39_s25 = sadd.s32 1, %s1962_s11 }
  0x52   : > { %2541 = sst [smem:[#allocation23_spill]] %s2153_s24  ;;  %s36_s26 = ssub.s32 %s1966_s12, %s2153_s24 }
  0x53   : > { %p46_p6 = scmp.ne.s32.totalorder %s1962_s11, %s1958_s10  ;;  %p37_p10 = scmp.eq.s32.totalorder %s36_s26, 0 }
  0x54   : > { %p47_p3 = scmp.eq.s32.totalorder %s1966_s12, 0  ;;  %p2542_p5 = scmp.eq.s32.totalorder %s2058_s13, 1 }
  0x55   : > { %p1605_p9 = scmp.lt.s32.totalorder %s1966_s12, 2  ;;  %s2513_s14 = sand.u32 1, %s1962_s11  }
  0x56   : > { %p2163_p7 = por %p2542_p5, %p46_p6  ;;  %p48_p12 = por %p47_p3, %p46_p6 }
  0x57   : > { %s2169_s29 = scalar_select %p37_p10, %s1962_s11, %s39_s25  }
  0x58   : > { %s2543_s27 = scalar_select %p2163_p7, 1, 0 }
  0x59   : > { %2544 = sst [smem:[#allocation24_spill]] %s2169_s29  ;;  %s2174_s22 = sshll.u32 %s2513_s14, 3 }
  0x5a   : > { %s2177_s18 = sshll.u32 %s1966_s12, 7  ;;  %p2179_p0 = pnand %p1605_p9, %p48_p12 }
  0x5b   : > { %s2520_s30 = sand.u32 1, %s1966_s12   ;;  %s2546_s1 = sld [smem:[#allocation25_spill]] }
  0x5c   : > { %s2545_s19 = scalar_select %p2179_p0, 1, 0 }
  0x5d   : > { %s352_s14 = scalar_lea.vmem [#allocation5], %s2174_s22  ;;  %s2195_s23 = scalar_lea.sflag [#allocation6], %s2520_s30 }
  0x5e   : > { %s359_s21 = sshll.u32 %s352_s14, 4  ;;  %p2201_p2 = pneg %p2179_p0  ;;  %s2191_s21 = int_to_ptr.vmem [resolvable:$true] %s359_s21 }
  0x61   : > { %s2188_s25 = scalar_lea.hbm %s2546_s1, %s2177_s18  ;;  %s1741_s14 = scalar_lea.hbm %s2546_s1, 256 }
  0x62   : > { %s1736_s4 = scalar_lea.hbm %s2188_s25, 128  ;;  %p1742_p3 = scmp.lt.u32.totalorder %s2188_s25, %s2546_s1 }
  0x63   : > { %p1737_p1 = scmp.ne.s32.totalorder %s2188_s25, %s1736_s4  ;;  %p1743_p5 = scmp.lt.u32.totalorder %s1741_s14, %s1736_s4 }
  0x64   : > { %p1745_p12 = scmp.lt.u32.totalorder %s1736_s4, %s2188_s25 }
  0x65   : > { %p1739_p6 = pnand %p2201_p2, %p1737_p1  ;;  %p1744_p9 = por %p1743_p5, %p1742_p3 }
  0x67   : > { %p1740_p10 = pneg %p1739_p6  ;;  %p1746_p7 = por %p1745_p12, %p1744_p9 }
  0x69   : > { %p1747_p4 = pnand %p1746_p7, %p1740_p10 }
  0x6b   : > { %1750 = shalt.err (!%p1747_p4)
}
  0x6c   : > { %s1751_s30 = scalar_lea.vmem %s2191_s21, 128  ;;  %s1972_s16 = smov [#allocation5]  }
  0x6d   : > { %p1752_p1 = scmp.ne.s32.totalorder %s2191_s21, %s1751_s30  ;;  %s1756_s26 = sshll.u32 %s1972_s16, 4  ;;  %s1757_s26 = int_to_ptr.vmem [resolvable:$false] %s1756_s26 }
  0x6e   : > { %s1758_s24 = scalar_lea.vmem %s1757_s26, 256  ;;  %p1759_p11 = scmp.lt.s32.totalorder %s2191_s21, %s1757_s26 }
  0x6f   : > { %p1754_p6 = pnand %p1752_p1, %p2201_p2  ;;  %p1760_p13 = scmp.lt.s32.totalorder %s1758_s24, %s1751_s30 }
  0x71   : > { %p1755_p8 = pneg %p1754_p6  ;;  %p1761_p3 = por %p1760_p13, %p1759_p11 }
  0x73   : > { %p1762_p5 = pnand %p1761_p3, %p1755_p8 }
  0x75   : > { %1765 = shalt.err (!%p1762_p5)
}
  0x76   : > { %1591 = dma.hbm_to_vmem [thread:$0]  (!%p2179_p0), %s2188_s25, 128, %s2191_s21, %s2195_s23  }
  0x77   : > { %s1973_s4 = smov [#allocation13]   ;;  %s1766_s16 = scalar_lea.hbm %s2507_s7, 256 }
  0x78   : > { %s313_s29 = sshll.u32 %s1973_s4, 4  ;;  %p1767_p4 = scmp.ne.s32.totalorder %s2507_s7, %s1766_s16  ;;  %s314_s29 = int_to_ptr.vmem [resolvable:$true] %s313_s29 }
  0x79   : > { %p2548_p8 = scmp.ne.s32.totalorder %s2539_s28, 0  ;;  %p1773_p7 = scmp.lt.u32.totalorder %s1766_s16, %s2507_s7 }
  0x7b   : > { %p1769_p11 = pnand %p1767_p4, %p2548_p8 }
  0x7d   : > { %p1770_p13 = pneg %p1769_p11 }
  0x7f   : > { %p1775_p10 = pnand %p1773_p7, %p1770_p13 }
  0x81   : > { %1778 = shalt.err (!%p1775_p10)
}
  0x82   : > { %s1779_s21 = scalar_lea.vmem %s314_s29, 256  ;;  %p1787_p6 = scmp.lt.s32.totalorder %s314_s29, %s314_s29 }
  0x83   : > { %p1780_p9 = scmp.ne.s32.totalorder %s314_s29, %s1779_s21  ;;  %p1788_p3 = scmp.lt.s32.totalorder %s1779_s21, %s1779_s21 }
  0x85   : > { %p1782_p12 = pnand %p1780_p9, %p2548_p8  ;;  %p1789_p5 = por %p1788_p3, %p1787_p6 }
  0x87   : > { %p1783_p1 = pneg %p1782_p12 }
  0x89   : > { %p1790_p0 = pnand %p1789_p5, %p1783_p1 }
  0x8b   : > { %1793 = shalt.err (!%p1790_p0)
}
  0x8c   : > { %p2549_p4 = scmp.ne.s32.totalorder %s2537_s20, 0  ;;  %s2550_s1 = smov 4  }
  0x8d   : > { %s2551_s9 = smov 64   ;;  %s2250_s16 = scalar_lea.hbm %s2500_s0, %s2177_s18 }
  0x8e   : > { %1584 = dma.hbm_to_vmem [thread:$0]  (!%p2549_p4), %s2507_s7, 256, %s314_s29, [#allocation12], %s2551_s9, %s2551_s9, %s2550_s1  }
  0x8f   : > { %s334_s20 = scalar_lea.vmem [#allocation2], %s2174_s22  ;;  %s2552_s30 = sand.u32 1, %s1962_s11  }
  0x90   : > { %s341_s26 = sshll.u32 %s334_s20, 4  ;;  %s331_s24 = scalar_lea.sflag [#allocation3], %s2552_s30  ;;  %s342_s26 = int_to_ptr.vmem [resolvable:$true] %s341_s26 }
  0x91   : > { %s1794_s21 = scalar_lea.hbm %s2250_s16, 128  ;;  %s1799_s9 = scalar_lea.hbm %s2500_s0, 256 }
  0x92   : > { %p1795_p0 = scmp.ne.s32.totalorder %s2250_s16, %s1794_s21  ;;  %p1800_p13 = scmp.lt.u32.totalorder %s2250_s16, %s2500_s0 }
  0x93   : > { %p1801_p7 = scmp.lt.u32.totalorder %s1799_s9, %s1794_s21  ;;  %p1803_p9 = scmp.lt.u32.totalorder %s1794_s21, %s2250_s16 }
  0x94   : > { %p1797_p8 = pnand %p1795_p0, %p2201_p2 }
  0x95   : > { %p1802_p10 = por %p1801_p7, %p1800_p13 }
  0x96   : > { %p1798_p11 = pneg %p1797_p8 }
  0x97   : > { %p1804_p12 = por %p1803_p9, %p1802_p10 }
  0x99   : > { %p1805_p1 = pnand %p1804_p12, %p1798_p11 }
  0x9b   : > { %1808 = shalt.err (!%p1805_p1)
}
  0x9c   : > { %s1809_s28 = scalar_lea.vmem %s342_s26, 128  ;;  %s1974_s14 = smov [#allocation2]  }
  0x9d   : > { %p1810_p6 = scmp.ne.s32.totalorder %s342_s26, %s1809_s28  ;;  %s1814_s20 = sshll.u32 %s1974_s14, 4  ;;  %s1815_s20 = int_to_ptr.vmem [resolvable:$false] %s1814_s20 }
  0x9e   : > { %s1816_s30 = scalar_lea.vmem %s1815_s20, 256  ;;  %p1817_p4 = scmp.lt.s32.totalorder %s342_s26, %s1815_s20 }
  0x9f   : > { %p1812_p3 = pnand %p1810_p6, %p2201_p2  ;;  %p1818_p0 = scmp.lt.s32.totalorder %s1816_s30, %s1809_s28 }
  0xa1   : > { %p1813_p5 = pneg %p1812_p3  ;;  %p1819_p8 = por %p1818_p0, %p1817_p4 }
  0xa3   : > { %p1820_p7 = pnand %p1819_p8, %p1813_p5 }
  0xa5   : > { %1823 = shalt.err (!%p1820_p7)
}
  0xa6   : > { %p2553_p13 = scmp.ne.s32.totalorder %s2545_s19, 0  ;;  %s2276_s1 = scalar_lea.hbm %s2502_s2, %s2177_s18 }
  0xa7   : > { %s370_s9 = scalar_lea.vmem [#allocation7], %s2174_s22  ;;  %s1824_s4 = scalar_lea.hbm %s2276_s1, 128 }
  0xa8   : > { %1588 = dma.hbm_to_vmem [thread:$0]  (!%p2553_p13), %s2250_s16, 128, %s342_s26, %s331_s24  }
  0xa9   : > { %s377_s25 = sshll.u32 %s370_s9, 4  ;;  %p1825_p11 = scmp.ne.s32.totalorder %s2276_s1, %s1824_s4  ;;  %s378_s25 = int_to_ptr.vmem [resolvable:$true] %s377_s25 }
  0xaa   : > { %s1829_s16 = scalar_lea.hbm %s2502_s2, 256  ;;  %p1830_p12 = scmp.lt.u32.totalorder %s2276_s1, %s2502_s2 }
  0xab   : > { %p1827_p10 = pnand %p1825_p11, %p2201_p2  ;;  %p1831_p1 = scmp.lt.u32.totalorder %s1829_s16, %s1824_s4 }
  0xac   : > { %p1833_p3 = scmp.lt.u32.totalorder %s1824_s4, %s2276_s1 }
  0xad   : > { %p1828_p9 = pneg %p1827_p10  ;;  %p1832_p6 = por %p1831_p1, %p1830_p12 }
  0xaf   : > { %p1834_p5 = por %p1833_p3, %p1832_p6 }
  0xb1   : > { %p1835_p4 = pnand %p1834_p5, %p1828_p9 }
  0xb3   : > { %1838 = shalt.err (!%p1835_p4)
}
  0xb4   : > { %s1839_s20 = scalar_lea.vmem %s378_s25, 128  ;;  %s1975_s30 = smov [#allocation7]  }
  0xb5   : > { %p1840_p0 = scmp.ne.s32.totalorder %s378_s25, %s1839_s20  ;;  %s1844_s21 = sshll.u32 %s1975_s30, 4  ;;  %s1845_s21 = int_to_ptr.vmem [resolvable:$false] %s1844_s21 }
  0xb6   : > { %s1846_s29 = scalar_lea.vmem %s1845_s21, 256  ;;  %p1847_p11 = scmp.lt.s32.totalorder %s378_s25, %s1845_s21 }
  0xb7   : > { %p1842_p8 = pnand %p1840_p0, %p2201_p2  ;;  %p1848_p10 = scmp.lt.s32.totalorder %s1846_s29, %s1839_s20 }
  0xb9   : > { %p1843_p7 = pneg %p1842_p8  ;;  %p1849_p13 = por %p1848_p10, %p1847_p11 }
  0xbb   : > { %p1850_p1 = pnand %p1849_p13, %p1843_p7 }
  0xbd   : > { %1853 = shalt.err (!%p1850_p1)
}
  0xbe   : > { %p2554_p12 = scmp.ne.s32.totalorder %s2545_s19, 0  ;;  %s2301_s28 = scalar_lea.hbm %s2503_s3, %s2177_s18 }
  0xbf   : > { %s388_s14 = scalar_lea.vmem [#allocation8], %s2174_s22  ;;  %s2555_s26 = sand.u32 1, %s1966_s12  }
  0xc0   : > { %1594 = dma.hbm_to_vmem [thread:$0]  (!%p2554_p12), %s2276_s1, 128, %s378_s25, %s2195_s23  }
  0xc1   : > { %s395_s16 = sshll.u32 %s388_s14, 4  ;;  %s385_s24 = scalar_lea.sflag [#allocation9], %s2555_s26  ;;  %s396_s16 = int_to_ptr.vmem [resolvable:$true] %s395_s16 }
  0xc2   : > { %s1854_s20 = scalar_lea.hbm %s2301_s28, 128  ;;  %s1859_s25 = scalar_lea.hbm %s2503_s3, 256 }
  0xc3   : > { %p1855_p13 = scmp.ne.s32.totalorder %s2301_s28, %s1854_s20  ;;  %p1860_p3 = scmp.lt.u32.totalorder %s2301_s28, %s2503_s3 }
  0xc4   : > { %p1861_p5 = scmp.lt.u32.totalorder %s1859_s25, %s1854_s20  ;;  %p1863_p0 = scmp.lt.u32.totalorder %s1854_s20, %s2301_s28 }
  0xc5   : > { %p1857_p9 = pnand %p1855_p13, %p2201_p2 }
  0xc6   : > { %p1862_p4 = por %p1861_p5, %p1860_p3 }
  0xc7   : > { %p1858_p6 = pneg %p1857_p9 }
  0xc8   : > { %p1864_p8 = por %p1863_p0, %p1862_p4 }
  0xca   : > { %p1865_p7 = pnand %p1864_p8, %p1858_p6 }
  0xcc   : > { %1868 = shalt.err (!%p1865_p7)
}
  0xcd   : > { %s1869_s22 = scalar_lea.vmem %s396_s16, 128  ;;  %s1976_s21 = smov [#allocation8]  }
  0xce   : > { %p1870_p11 = scmp.ne.s32.totalorder %s396_s16, %s1869_s22  ;;  %s1874_s29 = sshll.u32 %s1976_s21, 4  ;;  %s1875_s29 = int_to_ptr.vmem [resolvable:$false] %s1874_s29 }
  0xcf   : > { %s1876_s9 = scalar_lea.vmem %s1875_s29, 256  ;;  %p1877_p13 = scmp.lt.s32.totalorder %s396_s16, %s1875_s29 }
  0xd0   : > { %p1872_p10 = pnand %p1870_p11, %p2201_p2  ;;  %p1878_p9 = scmp.lt.s32.totalorder %s1876_s9, %s1869_s22 }
  0xd2   : > { %p1873_p1 = pneg %p1872_p10  ;;  %p1879_p12 = por %p1878_p9, %p1877_p13 }
  0xd4   : > { %p1880_p3 = pnand %p1879_p12, %p1873_p1 }
  0xd6   : > { %1883 = shalt.err (!%p1880_p3)
}
  0xd7   : > { %p2556_p5 = scmp.ne.s32.totalorder %s2545_s19, 0  ;;  %p2557_p6 = scmp.ne.s32.totalorder %s2536_s17, 0 }
  0xd8   : > { %s2326_s6 = sand.u32 (!%p2557_p6), 1, %s1958_s10   ;;  %p2558_p2 = scmp.ne.s32.totalorder (!%p2557_p6), %s2533_s15, 0 }
  0xd9   : > { %1597 = dma.hbm_to_vmem [thread:$0]  (!%p2556_p5), %s2301_s28, 128, %s396_s16, %s385_s24  }
  0xda   : > { %404 = sbr.rel (%p2557_p6) target bundleno = 1691 (0x69b), region = 56  ;;  %s2329_s4 = sshll.u32 (!%p2557_p6), %s2326_s6, 3 }
  0xdb   : > { %s407_s14 = scalar_lea.sflag (!%p2557_p6), [#allocation3], %s2326_s6  ;;  %s410_s26 = scalar_lea.vmem (!%p2557_p6), [#allocation2], %s2329_s4 }
  0xe1   : > { %1929 = dma.done.wait (%p2558_p2), %s407_s14, 128  }
  0xe2   : > { %1931 = vsyncadd (%p2558_p2), %s407_s14, 4294967168  ;;  %s415_s17 = sand.u32 1, %s2058_s13   ;;  %s419_s28 = scalar_lea.vmem [#allocation5], %s2329_s4 }
  0xe3   : > { %s416_s19 = scalar_lea.sflag [#allocation6], %s415_s17 }
  0xe4   : > { %1933 = dma.done.wait (%p2558_p2), %s416_s19, 256  }
  0xe5   : > { %1935 = vsyncadd (%p2558_p2), %s416_s19, 4294967040  ;;  %s428_s16 = scalar_lea.vmem [#allocation7], %s2329_s4  ;;  %s434_s24 = scalar_lea.sflag [#allocation9], %s415_s17 }
  0xe6   : > { %s437_s20 = scalar_lea.vmem [#allocation8], %s2329_s4 }
  0xe7   : > { %1937 = dma.done.wait (%p2558_p2), %s434_s24, 128  }
  0xe8   : > { %1939 = vsyncadd (%p2558_p2), %s434_s24, 4294967168  ;;  %p2559_p12 = scmp.eq.s32.totalorder %s2058_s13, 0 }
  0xea   : > { %1941 = dma.done.wait (%p2559_p12), [#allocation9], 256   ;;  %p2560_p4 = pmov %p2559_p12 }
  0xec   : > { %1943 = vsyncadd (%p2560_p4), [#allocation9], 4294967040  ;;  %p2561_p0 = pmov %p2560_p4 }
  0xee   : > { %1945 = dma.done.wait (%p2561_p0), [#allocation12], 512   ;;  %p2562_p8 = pmov %p2561_p0 }
  0xef   : > { %v1977_v0 = vmov 0.0   ;;  %vm1978_vm0 = vmmov 0   ;;  %v1656_v1 = vld [vmem:[%s2505_s5] sm:$0xff]   ;;  %v1658_v3 = vld [vmem:[%s2505_s5 + $0x8] sm:$0xff]   ;;  %v502_v5 = vld [vmem:[%s419_s28] sm:$0xff]  ;;  %vm522_vm1 = vcmask 261120  }
  0xf0   : > { %1947 = vsyncadd (%p2562_p8), [#allocation12], 4294966784  ;;  %1481 = vmatprep.subr.bf16.mxu1 %v1977_v0  ;;  %1473 = vmatprep.subr.bf16.mxu0 %v1977_v0  ;;  %v1657_v2 = vld [vmem:[#allocation10] sm:$0xff]   ;;  %v1659_v4 = vld [vmem:[#allocation10 + $0x8] sm:$0xff]   ;;  %v503_v7 = vpack.c.bf16 %v502_v5, %v502_v5  ;;  %vm691_vm2 = vcmask 64512   ;;  %s1979_s18 = smov 112  }
  0xf1   : > { %1485 = vmatprep.mubr.msk.bf16.mxu1 %vm1978_vm0, %v1977_v0  ;;  %1477 = vmatprep.mubr.msk.bf16.mxu0 %vm1978_vm0, %v1977_v0  ;;  %v500_v6 = vld [vmem:[%s410_s26] sm:$0xff]  ;;  %s1980_s30 = smov 120   ;;  %s1981_s22 = smov 104   ;;  %v1660_v21 = vld [vmem:[#allocation11] sm:$0xff]   ;;  %v1661_v22 = vld [vmem:[#allocation11 + $0x8] sm:$0xff]   ;;  %vm753_vm4 = vcmask 1043456  }
  0xf2   : > { %1482 = vmatpush3.bf16.msra.mxu1 %v1656_v1  ;;  %1474 = vmatpush3.bf16.msra.mxu0 %v1657_v2  ;;  %v501_v8 = vpack.c.bf16 %v500_v6, %v500_v6  ;;  %v504_v23 = vld [vmem:[%s428_s16] sm:$0xff]  ;;  %v688_v34 = vld [vmem:[%s437_s20] sm:$0xff]  ;;  %v1982_v35 = vmov -1e+09   ;;  %s1983_s21 = smov 8   ;;  %s1984_s29 = smov 16  }
  0xf3   : > { %1483 = vmatprep.subr.bf16.mxu1 %v1977_v0  ;;  %1475 = vmatprep.subr.bf16.mxu0 %v1977_v0  ;;  %v505_v24 = vpack.c.bf16 %v504_v23, %v504_v23  ;;  %vm689_vm3 = vcmp.gt.f32.partialorder %v688_v34, 0.0  ;;  %s1985_s9 = smov 24   ;;  %vm1146_vm5 = vcmask 130048   ;;  %vm1149_vm6 = vcmask 195584   ;;  %s1442_s17 = sshll.u32 %s2058_s13, 7 }
  0xf4   : > { %v690_v36 = vsel %vm689_vm3, 0.0, %v1982_v35  ;;  %s498_s19 = scalar_lea.vmem [#allocation14], %s2329_s4  ;;  %s2563_s20 = sld [smem:[#allocation28_spill]] }
  0xf5   : > { %s1233_s28 = sshll.u32 %s498_s19, 4  ;;  %s1220_s13 = scalar_lea.sflag [#allocation4], %s2326_s6  ;;  %s2457_s28 = int_to_ptr.vmem [resolvable:$true] %s1233_s28 }
  0xf6   : > { %1484 = vmatpush3.bf16.msra.mxu1 %v1658_v3  ;;  %1476 = vmatpush3.bf16.msra.mxu0 %v1659_v4  ;;  %s1884_s4 = scalar_lea.vmem %s2457_s28, 128  ;;  %p2564_p11 = scmp.ne.s32.totalorder %s2543_s27, 0 }
  0xf7   : > { %1497 = vmatprep.subr.bf16.mxu1 %v1977_v0  ;;  %1489 = vmatprep.subr.bf16.mxu0 %v1977_v0  ;;  %p1885_p7 = scmp.ne.s32.totalorder %s2457_s28, %s1884_s4  ;;  %s1986_s23 = smov [#allocation14]  }
  0xf8   : > { %s1888_s1 = sshll.u32 %s1986_s23, 4  ;;  %s1889_s1 = int_to_ptr.vmem [resolvable:$false] %s1888_s1 }
  0xf9   : > { %1486 = vmatmul.mubr.msk.bf16.vlgmr.msra.gmra.mrb[0].mxu1 %vm522_vm1, %v503_v7  ;;  %1478 = vmatmul.mubr.msk.bf16.vlgmr.msra.gmra.mrb[0].mxu0 %vm522_vm1, %v501_v8  ;;  %p1886_p10 = pnand %p1885_p7, %p2564_p11  ;;  %s1890_s25 = scalar_lea.vmem %s1889_s1, 256 }
  0xfa   : > { %1499 = vmatprep.mubr.msk.bf16.mxu1 %vm1978_vm0, %v1977_v0  ;;  %1493 = vmatprep.mubr.msk.bf16.mxu0 %vm1978_vm0, %v1977_v0  ;;  %s2455_s15 = scalar_lea.hbm %s2563_s20, %s1442_s17  ;;  %p1891_p13 = scmp.lt.s32.totalorder %s2457_s28, %s1889_s1 }
  0xfb   : > { %1490 = vmatpush3.bf16.msra.mxu0 %v1660_v21  ;;  %p1887_p1 = pneg %p1886_p10  ;;  %p1892_p9 = scmp.lt.s32.totalorder %s1890_s25, %s1884_s4 }
  0xfc   : > { %1491 = vmatprep.subr.bf16.mxu0 %v1977_v0 }
  0xfd   : > { %p1893_p3 = por %p1892_p9, %p1891_p13 }
  0xff   : > { %1492 = vmatpush3.bf16.msra.mxu0 %v1661_v22  ;;  %p1894_p5 = pnand %p1893_p3, %p1887_p1 }
 0x100   : > { %1503 = vmatprep.subr.bf16.mxu0 %v1977_v0 }
 0x102   : > { %1494 = vmatmul.mubr.msk.bf16.vlgmr.msra.gmra.mrb[4].mxu0 %vm522_vm1, %v505_v24 }
 0x103   : > { %1505 = vmatprep.mubr.msk.bf16.mxu0 %vm1978_vm0, %v1977_v0 }
 0x1cc   : > { %v620_v9 = vpop.f32.mrb[0].mxu1  ;;  %v560_v12 = vpop.f32.mrb[0].mxu0 }
 0x1cd   : > { %v686_v10 = vpack.c.bf16 %v620_v9, %v620_v9  ;;  %v1487_v11 = vpop.f32.mrb[1].mxu1  ;;  %v566_v13 = vmul.f32 0.35355338, %v560_v12  ;;  %v1479_v15 = vpop.f32.mrb[1].mxu0 }
 0x1ce   : > { %v623_v14 = vpop.f32.mrb[2].mxu1  ;;  %v563_v18 = vpop.f32.mrb[2].mxu0 }
 0x1cf   : > { %914 = vrot.lane.b32.xlu1 %v686_v10, %s1979_s18  ;;  %802 = vrot.lane.b32.xlu0 %v686_v10, %s1980_s30  ;;  %v1488_v16 = vpop.f32.mrb[3].mxu1  ;;  %v696_v17 = vsel %vm691_vm2, %v686_v10, 0  ;;  %v685_v19 = vpack.c.bf16 %v566_v13, %v566_v13  ;;  %v1480_v20 = vpop.f32.mrb[3].mxu0 }
 0x1d0   : > { %1498 = vmatpush3.bf16.xpose.msra.mxu1 %v696_v17 }
 0x1d1   : > { %1509 = vmatprep.subr.bf16.mxu1 %v1977_v0 }
 0x1d3   : > { %912 = vrot.lane.b32.xlu1 %v685_v19, %s1979_s18  ;;  %799 = vrot.lane.b32.xlu0 %v685_v19, %s1980_s30 }
 0x1d5   : > { %v679_v43 = vpop.f32.mrb[4].mxu0 }
 0x1d6   : > { %v687_v44 = vpack.c.bf16 %v679_v43, %v679_v43  ;;  %v1495_v45 = vpop.f32.mrb[5].mxu0 }
 0x1d7   : > { %1023 = vrot.lane.b32.xlu1 %v685_v19, %s1981_s22  ;;  %1025 = vrot.lane.b32.xlu0 %v686_v10, %s1981_s22  ;;  %v682_v46 = vpop.f32.mrb[6].mxu0 }
 0x1d8   : > { %1500 = vmatmul.mubr.msk.bf16.vlgmr.msra.gmra.mrb[4].mxu1 %vm691_vm2, %v685_v19  ;;  %v1496_v47 = vpop.f32.mrb[7].mxu0  ;;  %v755_v48 = vsel %vm753_vm4, %v687_v44, 0 }
 0x1d9   : > { %1511 = vmatprep.mubr.msk.bf16.mxu1 %vm1978_vm0, %v1977_v0  ;;  %1504 = vmatpush3.bf16.msra.mxu0 %v755_v48 }
 0x1da   : > { %1515 = vmatprep.subr.bf16.mxu0 %v1977_v0 }
 0x241   : > { %v803_v25 = vpop.permute.xlu0 %802  ;;  %v915_v27 = vpop.permute.xlu1 %914 }
 0x242   : > { %v808_v26 = vsel %vm691_vm2, %v803_v25, 0  ;;  %v920_v29 = vsel %vm691_vm2, %v915_v27, 0 }
 0x243   : > { %1510 = vmatpush3.bf16.xpose.msra.mxu1 %v808_v26 }
 0x244   : > { %1521 = vmatprep.subr.bf16.mxu1 %v1977_v0 }
 0x245   : > { %v800_v28 = vpop.permute.xlu0 %799  ;;  %v913_v31 = vpop.permute.xlu1 %912 }
 0x249   : > { %v1026_v30 = vpop.permute.xlu0 %1025  ;;  %v1024_v33 = vpop.permute.xlu1 %1023 }
 0x24a   : > { %1512 = vmatmul.mubr.msk.bf16.vlgmr.msra.gmra.mrb[8].mxu1 %vm691_vm2, %v800_v28  ;;  %v1031_v32 = vsel %vm691_vm2, %v1026_v30, 0 }
 0x24b   : > { %1522 = vmatpush3.bf16.xpose.msra.mxu1 %v920_v29  ;;  %1523 = vmatprep.mubr.msk.bf16.mxu1 %vm1978_vm0, %v1977_v0 }
 0x24c   : > { %1533 = vmatprep.subr.bf16.mxu1 %v1977_v0 }
 0x252   : > { %1524 = vmatmul.mubr.msk.bf16.vlgmr.msra.gmra.mrb[12].mxu1 %vm691_vm2, %v913_v31 }
 0x253   : > { %1534 = vmatpush3.bf16.xpose.msra.mxu1 %v1031_v32  ;;  %1535 = vmatprep.mubr.msk.bf16.mxu1 %vm1978_vm0, %v1977_v0 }
 0x254   : > { %1545 = vmatprep.subr.bf16.mxu1 %v1977_v0 }
 0x25a   : > { %1536 = vmatmul.mubr.msk.bf16.vlgmr.msra.gmra.mrb[16].mxu1 %vm691_vm2, %v1024_v33 }
 0x25b   : > { %1549 = vmatprep.mubr.msk.bf16.mxu1 %vm1978_vm0, %v1977_v0 }
 0x2ab   : > { %v732_v37 = vpop.f32.mrb[4].mxu1 }
 0x2ac   : > { %v733_v38 = vadd.f32 %v732_v37, %v690_v36  ;;  %v1501_v39 = vpop.f32.mrb[5].mxu1 }
 0x2ad   : > { %v735_v40 = vpop.f32.mrb[6].mxu1 }
 0x2ae   : > { %v1502_v41 = vpop.f32.mrb[7].mxu1  ;;  %v738_v42 = vsel %vm691_vm2, %v733_v38, -inf }
 0x2af   : > { %739 = vmax.xlane.f32.xlu0 %v738_v42 }
 0x31d   : > { %v844_v49 = vpop.f32.mrb[8].mxu1 }
 0x31e   : > { %v845_v50 = vadd.f32 %v844_v49, %v690_v36  ;;  %v1513_v51 = vpop.f32.mrb[9].mxu1 }
 0x31f   : > { %v847_v52 = vpop.f32.mrb[10].mxu1 }
 0x320   : > { %v1514_v53 = vpop.f32.mrb[11].mxu1  ;;  %v850_v54 = vsel %vm691_vm2, %v845_v50, -inf }
 0x321   : > { %851 = vmax.xlane.f32.xlu1 %v850_v54  ;;  %v1663_v54 = vld [vmem:[#allocation13 + $0x8] sm:$0xff]  }
 0x325   : > { %v956_v55 = vpop.f32.mrb[12].mxu1 }
 0x326   : > { %v957_v56 = vadd.f32 %v956_v55, %v690_v36  ;;  %v1525_v57 = vpop.f32.mrb[13].mxu1 }
 0x327   : > { %v959_v58 = vpop.f32.mrb[14].mxu1 }
 0x328   : > { %v1526_v59 = vpop.f32.mrb[15].mxu1  ;;  %v962_v60 = vsel %vm691_vm2, %v957_v56, -inf }
 0x329   : > { %963 = vmax.xlane.f32.xlu0 %v962_v60 }
 0x32d   : > { %v1067_v61 = vpop.f32.mrb[16].mxu1 }
 0x32e   : > { %v1068_v62 = vadd.f32 %v1067_v61, %v690_v36  ;;  %v1537_v63 = vpop.f32.mrb[17].mxu1 }
 0x32f   : > { %v1070_v1 = vpop.f32.mrb[18].mxu1 }
 0x330   : > { %v1538_v2 = vpop.f32.mrb[19].mxu1  ;;  %v1073_v3 = vsel %vm691_vm2, %v1068_v62, -inf }
 0x331   : > { %1074 = vmax.xlane.f32.xlu0 %v1073_v3 }
 0x33c   : > { %v740_v4 = vpop.xlane.xlu0 %739 }
 0x33d   : > { %v741_v5 = vsub.f32 %v733_v38, %v740_v4 }
 0x33f   : > { %v742_v6 = vmul.f32 1.442695, %v741_v5 }
 0x341   : > { %1664 = vpow2.f32 %v742_v6 }
 0x34b   : > { %v1665_v7 = vpop.eup %1664 }
 0x34c   : > { %v744_v8 = vsel %vm691_vm2, %v1665_v7, 0.0 }
 0x34d   : > { %745 = vadd.xlane.f32.xlu1 %v744_v8 }
 0x35e   : > { %863 = vrot.lane.b32.xlu1 %v687_v44, %s1980_s30 }
 0x3ae   : > { %v852_v9 = vpop.xlane.xlu1 %851 }
 0x3af   : > { %v853_v10 = vsub.f32 %v845_v50, %v852_v9  ;;  %v1662_v50 = vld [vmem:[#allocation13] sm:$0xff]  }
 0x3b0   : > { %1546 = vmatpush3.bf16.msra.mxu1 %v1662_v50 }
 0x3b1   : > { %v854_v11 = vmul.f32 1.442695, %v853_v10  ;;  %1547 = vmatprep.subr.bf16.mxu1 %v1977_v0  ;;  %v1440_v10 = vld [vmem:[%s2508_s8] ss:$0 sm:$0xff] }
 0x3b3   : > { %1666 = vpow2.f32 %v854_v11 }
 0x3b4   : > { %1548 = vmatpush3.bf16.msra.mxu1 %v1663_v54 }
 0x3b6   : > { %v964_v12 = vpop.xlane.xlu0 %963 }
 0x3b7   : > { %v965_v13 = vsub.f32 %v957_v56, %v964_v12 }
 0x3b9   : > { %v966_v14 = vmul.f32 1.442695, %v965_v13 }
 0x3bb   : > { %1668 = vpow2.f32 %v966_v14 }
 0x3bd   : > { %v1667_v15 = vpop.eup %1666 }
 0x3be   : > { %v1075_v16 = vpop.xlane.xlu0 %1074  ;;  %v856_v17 = vsel %vm691_vm2, %v1667_v15, 0.0 }
 0x3bf   : > { %v1076_v18 = vsub.f32 %v1068_v62, %v1075_v16  ;;  %857 = vadd.xlane.f32.xlu0 %v856_v17 }
 0x3c1   : > { %v1077_v19 = vmul.f32 1.442695, %v1076_v18 }
 0x3c3   : > { %1670 = vpow2.f32 %v1077_v19 }
 0x3c5   : > { %v1669_v20 = vpop.eup %1668 }
 0x3c6   : > { %v968_v21 = vsel %vm691_vm2, %v1669_v20, 0.0 }
 0x3c7   : > { %969 = vadd.xlane.f32.xlu1 %v968_v21 }
 0x3cd   : > { %v1671_v22 = vpop.eup %1670 }
 0x3ce   : > { %v1079_v23 = vsel %vm691_vm2, %v1671_v22, 0.0 }
 0x3cf   : > { %1080 = vadd.xlane.f32.xlu0 %v1079_v23 }
 0x3d8   : > { %1085 = vrot.lane.b32.xlu1 %v687_v44, %s1981_s22 }
 0x3da   : > { %v746_v24 = vpop.xlane.xlu1 %745 }
 0x3db   : > { %1672 = vrcp.f32 %v746_v24 }
 0x3de   : > { %v864_v26 = vpop.permute.xlu1 %863 }
 0x3df   : > { %v869_v29 = vsel %vm753_vm4, %v864_v26, 0 }
 0x3e5   : > { %v1673_v25 = vpop.eup %1672  ;;  %974 = vrot.lane.b32.xlu0 %v687_v44, %s1979_s18 }
 0x3e6   : > { %v748_v27 = vmul.f32 %v1673_v25, %v1665_v7 }
 0x3e8   : > { %v749_v28 = vpack.c.bf16 %v748_v27, %v748_v27 }
 0x3ea   : > { %1506 = vmatmul.mubr.msk.bf16.vlgmr.msra.gmra.mrb[8].mxu0 %vm691_vm2, %v749_v28 }
 0x3eb   : > { %1516 = vmatpush3.bf16.msra.mxu0 %v869_v29  ;;  %1517 = vmatprep.mubr.msk.bf16.mxu0 %vm1978_vm0, %v1977_v0 }
 0x3ec   : > { %1527 = vmatprep.subr.bf16.mxu0 %v1977_v0 }
 0x44c   : > { %v858_v30 = vpop.xlane.xlu0 %857 }
 0x44d   : > { %1674 = vrcp.f32 %v858_v30 }
 0x454   : > { %v970_v31 = vpop.xlane.xlu1 %969 }
 0x455   : > { %1676 = vrcp.f32 %v970_v31 }
 0x457   : > { %v1675_v32 = vpop.eup %1674 }
 0x458   : > { %v860_v33 = vmul.f32 %v1675_v32, %v1667_v15  ;;  %v1086_v40 = vpop.permute.xlu1 %1085 }
 0x459   : > { %v1091_v42 = vsel %vm753_vm4, %v1086_v40, 0 }
 0x45a   : > { %v861_v34 = vpack.c.bf16 %v860_v33, %v860_v33 }
 0x45c   : > { %v1081_v35 = vpop.xlane.xlu0 %1080  ;;  %1518 = vmatmul.mubr.msk.bf16.vlgmr.msra.gmra.mrb[12].mxu0 %vm691_vm2, %v861_v34 }
 0x45d   : > { %1678 = vrcp.f32 %v1081_v35  ;;  %1529 = vmatprep.mubr.msk.bf16.mxu0 %vm1978_vm0, %v1977_v0 }
 0x45f   : > { %v1677_v36 = vpop.eup %1676 }
 0x460   : > { %v972_v37 = vmul.f32 %v1677_v36, %v1669_v20  ;;  %v975_v38 = vpop.permute.xlu0 %974 }
 0x461   : > { %v980_v39 = vsel %vm753_vm4, %v975_v38, 0 }
 0x462   : > { %1528 = vmatpush3.bf16.msra.mxu0 %v980_v39  ;;  %v973_v41 = vpack.c.bf16 %v972_v37, %v972_v37 }
 0x463   : > { %1539 = vmatprep.subr.bf16.mxu0 %v1977_v0 }
 0x465   : > { %1530 = vmatmul.mubr.msk.bf16.vlgmr.msra.gmra.mrb[16].mxu0 %vm691_vm2, %v973_v41 }
 0x466   : > { %1540 = vmatpush3.bf16.msra.mxu0 %v1091_v42  ;;  %1541 = vmatprep.mubr.msk.bf16.mxu0 %vm1978_vm0, %v1977_v0 }
 0x467   : > { %v1679_v43 = vpop.eup %1678 }
 0x468   : > { %v1083_v44 = vmul.f32 %v1679_v43, %v1671_v22 }
 0x46a   : > { %v1084_v45 = vpack.c.bf16 %v1083_v44, %v1083_v44 }
 0x46d   : > { %1542 = vmatmul.mubr.msk.bf16.vlgmr.msra.gmra.mrb[20].mxu0 %vm691_vm2, %v1084_v45 }
 0x4bd   : > { %v791_v46 = vpop.f32.mrb[8].mxu0 }
 0x4be   : > { %v1507_v47 = vpop.f32.mrb[9].mxu0  ;;  %v797_v4 = vpack.c.bf16 %v791_v46, %v791_v46 }
 0x4bf   : > { %v794_v48 = vpop.f32.mrb[10].mxu0 }
 0x4c0   : > { %v1508_v49 = vpop.f32.mrb[11].mxu0 }
 0x52f   : > { %v905_v51 = vpop.f32.mrb[12].mxu0 }
 0x530   : > { %v911_v52 = vpack.c.bf16 %v905_v51, %v905_v51  ;;  %v1519_v53 = vpop.f32.mrb[13].mxu0 }
 0x531   : > { %v908_v55 = vpop.f32.mrb[14].mxu0 }
 0x532   : > { %1135 = vrot.lane.b32.xlu1 %v911_v52, %s1983_s21  ;;  %v1520_v56 = vpop.f32.mrb[15].mxu0 }
 0x538   : > { %v1016_v57 = vpop.f32.mrb[16].mxu0 }
 0x539   : > { %v1022_v58 = vpack.c.bf16 %v1016_v57, %v1016_v57  ;;  %v1531_v59 = vpop.f32.mrb[17].mxu0 }
 0x53a   : > { %v1019_v60 = vpop.f32.mrb[18].mxu0 }
 0x53b   : > { %1138 = vrot.lane.b32.xlu0 %v1022_v58, %s1984_s29  ;;  %v1532_v61 = vpop.f32.mrb[19].mxu0 }
 0x540   : > { %v1127_v62 = vpop.f32.mrb[20].mxu0 }
 0x541   : > { %v1133_v63 = vpack.c.bf16 %v1127_v62, %v1127_v62  ;;  %v1543_v1 = vpop.f32.mrb[21].mxu0 }
 0x542   : > { %v1130_v2 = vpop.f32.mrb[22].mxu0 }
 0x543   : > { %1141 = vrot.lane.b32.xlu1 %v1133_v63, %s1985_s9  ;;  %v1544_v0 = vpop.f32.mrb[23].mxu0 }
 0x5a4   : > { %v1136_v3 = vpop.permute.xlu1 %1135 }
 0x5a5   : > { %v1145_v6 = vsel %vm691_vm2, %v797_v4, %v1136_v3 }
 0x5ad   : > { %v1139_v5 = vpop.permute.xlu0 %1138 }
 0x5ae   : > { %v1148_v7 = vsel %vm1146_vm5, %v1145_v6, %v1139_v5 }
 0x5b5   : > { %v1142_v8 = vpop.permute.xlu1 %1141 }
 0x5b6   : > { %v1151_v9 = vsel %vm1149_vm6, %v1148_v7, %v1142_v8 }
 0x5b7   : > { %1550 = vmatmul.mubr.msk.bf16.vlgmr.msra.gmra.mrb[20].mxu1 %vm522_vm1, %v1151_v9 }
 0x68a   : > { %v1204_v11 = vpop.f32.mrb[20].mxu1 }
 0x68b   : > { %v1217_v12 = vadd.f32 %v1440_v10, %v1204_v11  ;;  %v1551_v13 = vpop.f32.mrb[21].mxu1 }
 0x68c   : > { %v1207_v14 = vpop.f32.mrb[22].mxu1 }
 0x68d   : > { %v1552_v15 = vpop.f32.mrb[23].mxu1  ;;  %1218 = vst.msk [vmem:[%s498_s19] sm:$0xff] %vm522_vm1, %v1217_v12 }
 0x68e   : > { %1897 = shalt.err (!%p1894_p5)
}
 0x68f   : > { %s1898_s6 = scalar_lea.hbm %s2455_s15, 128  ;;  %s1902_s22 = scalar_lea.hbm %s2563_s20, 256 }
 0x690   : > { %p1899_p6 = scmp.ne.s32.totalorder %s2455_s15, %s1898_s6  ;;  %p1903_p4 = scmp.lt.u32.totalorder %s2455_s15, %s2563_s20 }
 0x691   : > { %p1904_p0 = scmp.lt.u32.totalorder %s1902_s22, %s1898_s6  ;;  %p1906_p7 = scmp.lt.u32.totalorder %s1898_s6, %s2455_s15 }
 0x692   : > { %p1900_p2 = pnand %p1899_p6, %p2564_p11 }
 0x693   : > { %p1905_p8 = por %p1904_p0, %p1903_p4 }
 0x694   : > { %p1901_p12 = pneg %p1900_p2 }
 0x695   : > { %p1907_p10 = por %p1906_p7, %p1905_p8 }
 0x697   : > { %p1908_p1 = pnand %p1907_p10, %p1901_p12 }
 0x699   : > { %1911 = shalt.err (!%p1908_p1)
}
 0x69a   : > { %1573 = dma.vmem_to_hbm [thread:$0]  (%p2564_p11), %s2457_s28, 128, %s2455_s15, %s1220_s13  }
 0x69b PF: > { %s2565_s9 = sld [smem:[#allocation21_spill]]  ;;  %s2566_s14 = sld [smem:[#allocation22_spill]] }
 0x69c   : > { %p2568_p9 = scmp.ge.s32.totalorder %s1966_s12, 2 }
 0x6a1   : > { %s1245_s26 = sand.u32 1, %s2565_s9   ;;  %p2567_p13 = scmp.ne.s32.totalorder %s2566_s14, 0 }
 0x6a2   : > { %s1246_s17 = scalar_lea.sflag [#allocation4], %s1245_s26 }
 0x6a3   : > { %p1599_p3 = pnand %p2568_p9, %p2567_p13 }
 0x6a5   : > { %1949 = dma.done.wait (!%p1599_p3), %s1246_s17, 128  }
 0x6a6   : > { %1951 = vsyncadd (!%p1599_p3), %s1246_s17, 4294967168  ;;  %s2569_s12 = sld [smem:[#allocation23_spill]]  ;;  %s2570_s19 = sld [smem:[#allocation24_spill]] }
 0x6a7   : > { %s2571_s30 = smov %s1958_s10  ;;  %s2572_s10 = smov %s1962_s11 }
 0x6ac   : > { %p29_p5 = scmp.ge.s32.totalorder %s2569_s12, 4   ;;  %s2573_s11 = smov %s2570_s19 }
 0x6ae   :  { %31 = sbr.rel (!%p29_p5) target bundleno = 15 (0xf), region = 150 }
 0x6b5   :  { %1251 = vsyncpa [#allocation3], 1 }
 0x6b6   :  { %1253 = vsyncpa [#allocation3 + $0x1], 1 }
 0x6b7   :  { %1254 = vsyncpa [#allocation6], 1 }
 0x6b8   :  { %1256 = vsyncpa [#allocation6 + $0x1], 1 }
 0x6b9   :  { %1257 = vsyncpa [#allocation9], 1 }
 0x6ba   :  { %1259 = vsyncpa [#allocation9 + $0x1], 1 }
 0x6bb   :  { %1260 = vsyncpa [#allocation12], 1 }
 0x6bc   :  { %1261 = vsyncpa [#allocation4], 1 }
 0x6bd   :  { %1263 = vsyncpa [#allocation4 + $0x1], 1 }

</bundles_post_ra>
